<compile_context>
chip_gen: v6e
topology: v6e:2x2x1
jax: 0.10.0
libtpu: 0.0.40
codegen_flags: <defaults>
</compile_context>

<pallas_src>
import jax
import jax.numpy as jnp
from jax.experimental import pallas as pl
from jax.experimental.pallas import tpu as pltpu

HIDDEN = 128


def _round_up(x, m):
    return ((x + m - 1) // m) * m


def _cdiv(a, b):
    return -(-a // b)


def dqn_kernel(x_ref, w1_ref, b1_ref, w2_ref, b2_ref, w3_ref, b3_ref, out_ref):
    # Layer 1: ReLU(x @ W1 + b1).  x block is (tb, n_obs) f32; cast the MXU
    # operand to bf16 in-vreg (no wrapper pass / no padded HBM copy of x).
    x = x_ref[...].astype(jnp.bfloat16)
    h1 = jnp.dot(x, w1_ref[...], preferred_element_type=jnp.float32)
    h1 = jnp.maximum(h1 + b1_ref[...], 0.0)

    # Layer 2: ReLU(h1 @ W2 + b2)  (bf16 operands, f32 accumulation)
    h2 = jnp.dot(h1.astype(jnp.bfloat16), w2_ref[...],
                 preferred_element_type=jnp.float32)
    h2 = jnp.maximum(h2 + b2_ref[...], 0.0)

    # Layer 3: h2 @ W3 + b3  (no activation; lane-dense zero-padded output)
    y = jnp.dot(h2.astype(jnp.bfloat16), w3_ref[...],
                preferred_element_type=jnp.float32)
    out_ref[...] = (y + b3_ref[...]).astype(out_ref.dtype)


def prepare_params(w1, b1, w2, b2, w3, b3):
    """One-time preprocessing of PyTorch-style ([out, in]) weights.

    Transposes to [in, out], casts MXU operands to bf16, zero-pads the action
    dim to a lane multiple (exact: zero columns contribute nothing), and
    reshapes biases to (1, N) f32.  Call once and reuse every forward step.
    """
    hidden = w1.shape[0]
    n_actions = w3.shape[0]
    f_out = _round_up(max(n_actions, 128), 128)
    bf16 = jnp.bfloat16

    w1t = w1.T.astype(bf16)                                   # (n_obs, hidden)
    w2t = w2.T.astype(bf16)                                   # (hidden, hidden)
    w3t = jnp.zeros((hidden, f_out), bf16).at[:, :n_actions].set(
        w3.T.astype(bf16))                                    # (hidden, f_out)

    b1_2d = b1.reshape(1, hidden).astype(jnp.float32)
    b2_2d = b2.reshape(1, hidden).astype(jnp.float32)
    b3_2d = jnp.zeros((1, f_out), jnp.float32).at[0, :n_actions].set(
        b3.astype(jnp.float32))

    return (w1t, b1_2d, w2t, b2_2d, w3t, b3_2d, n_actions)


def dqn_forward(x, params, *, block_b=2048):
    """x: [B, n_obs] f32; params from prepare_params(); returns [B, n_actions] f32."""
    w1t, b1_2d, w2t, b2_2d, w3t, b3_2d, n_actions = params
    B, n_obs = x.shape
    hidden = w1t.shape[1]
    f_out = w3t.shape[1]

    # --- batch tiling -------------------------------------------------------
    # Cap rounded to a multiple of 8 (sublane-legal even for user-supplied
    # values).  Split the batch evenly across steps (waste < 8 rows/step); if
    # more than one step is needed, make the grid length even so both v7x
    # TensorCores get work (dimension_semantics=("parallel",)).
    block_b = _round_up(max(block_b, 8), 8)
    n_steps = _cdiv(B, block_b)
    if n_steps > 1 and n_steps % 2 == 1:
        n_steps += 1
    tb = _round_up(_cdiv(B, n_steps), 8)
    b_pad = n_steps * tb

    # Only the (cheap, narrow) batch pad is materialized; no lane padding of x.
    x_p = x if b_pad == B else jnp.pad(x, ((0, b_pad - B), (0, 0)))

    out_padded = pl.pallas_call(
        dqn_kernel,
        out_shape=jax.ShapeDtypeStruct((b_pad, f_out), jnp.float32),
        grid_spec=pltpu.PrefetchScalarGridSpec(
            num_scalar_prefetch=0,
            grid=(n_steps,),
            in_specs=[
                # x: batch-tiled; last block dim == full array dim (legal,
                # K-padding happens only in VMEM/vregs inside the dot).
                pl.BlockSpec((tb, n_obs), lambda i: (i, 0)),
                # Weights / biases: constant index_map -> VMEM-resident
                # across all grid steps.
                pl.BlockSpec((n_obs, hidden), lambda i: (0, 0)),   # W1t
                pl.BlockSpec((1, hidden), lambda i: (0, 0)),       # b1
                pl.BlockSpec((hidden, hidden), lambda i: (0, 0)),  # W2t
                pl.BlockSpec((1, hidden), lambda i: (0, 0)),       # b2
                pl.BlockSpec((hidden, f_out), lambda i: (0, 0)),   # W3t
                pl.BlockSpec((1, f_out), lambda i: (0, 0)),        # b3
            ],
            # Lane-dense (128-wide) padded output -> unmasked vst.
            out_specs=pl.BlockSpec((tb, f_out), lambda i: (i, 0)),
        ),
        compiler_params=pltpu.CompilerParams(
            dimension_semantics=("parallel",),   # batch splits across TCs on v7x
        ),
    )(x_p, w1t, b1_2d, w2t, b2_2d, w3t, b3_2d)

    return out_padded[:B, :n_actions]


def init_params(key, n_observations, n_actions, hidden=HIDDEN):
    """PyTorch-Linear-style init: U(-1/sqrt(fan_in), 1/sqrt(fan_in))."""
    keys = jax.random.split(key, 6)

    def linear(kw, kb, fan_in, fan_out):
        bound = 1.0 / jnp.sqrt(jnp.float32(fan_in))
        w = jax.random.uniform(kw, (fan_out, fan_in), jnp.float32, -bound, bound)
        b = jax.random.uniform(kb, (fan_out,), jnp.float32, -bound, bound)
        return w, b

    w1, b1 = linear(keys[0], keys[1], n_observations, hidden)
    w2, b2 = linear(keys[2], keys[3], hidden, hidden)
    w3, b3 = linear(keys[4], keys[5], hidden, n_actions)
    return w1, b1, w2, b2, w3, b3


if __name__ == "__main__":
    key = jax.random.PRNGKey(0)
    k_x, k_p = jax.random.split(key)

    # Small shapes consistent with the module (CartPole-ish DQN).
    batch = 8
    n_observations = 4
    n_actions = 2

    x = jax.random.normal(k_x, (batch, n_observations), jnp.float32)
    w1, b1, w2, b2, w3, b3 = init_params(k_p, n_observations, n_actions)

    # Hoisted, one-time weight preprocessing (reused every forward call).
    params = prepare_params(w1, b1, w2, b2, w3, b3)

    out = dqn_forward(x, params)
    out = jax.block_until_ready(out)
    assert out.shape == (batch, n_actions)

    # Reference with the same bf16 operand rounding / f32 accumulation.
    xb = x.astype(jnp.bfloat16)
    w1b, w2b, w3b = (w.astype(jnp.bfloat16) for w in (w1, w2, w3))
    h1 = jnp.maximum(
        jnp.dot(xb, w1b.T, preferred_element_type=jnp.float32) + b1, 0.0)
    h2 = jnp.maximum(
        jnp.dot(h1.astype(jnp.bfloat16), w2b.T,
                preferred_element_type=jnp.float32) + b2, 0.0)
    ref = jnp.dot(h2.astype(jnp.bfloat16), w3b.T,
                  preferred_element_type=jnp.float32) + b3
    assert jnp.allclose(out, ref, atol=1e-3, rtol=1e-3)

    # Loose sanity check against the full-precision PyTorch-equivalent forward.
    h1f = jax.nn.relu(x @ w1.T + b1)
    h2f = jax.nn.relu(h1f @ w2.T + b2)
    ref_f32 = h2f @ w3.T + b3
    assert jnp.allclose(out, ref_f32, atol=5e-2, rtol=5e-2)

    print("KERNEL_OK")
</pallas_src>

<mosaic_0001>
module attributes {stable_mosaic.version = 11 : i64} {
  func.func @dqn_kernel(%arg0: i32, %arg1: memref<8x4xf32, #tpu.memory_space<vmem>>, %arg2: memref<4x128xbf16, #tpu.memory_space<vmem>>, %arg3: memref<1x128xf32, #tpu.memory_space<vmem>>, %arg4: memref<128x128xbf16, #tpu.memory_space<vmem>>, %arg5: memref<1x128xf32, #tpu.memory_space<vmem>>, %arg6: memref<128x128xbf16, #tpu.memory_space<vmem>>, %arg7: memref<1x128xf32, #tpu.memory_space<vmem>>, %arg8: memref<8x128xf32, #tpu.memory_space<vmem>>) attributes {dimension_semantics = [#tpu.dimension_semantics<parallel>], iteration_bounds = array<i64: 1>, scalar_prefetch = 0 : i64, scratch_operands = 0 : i64, tpu.core_type = #tpu.core_type<tc>, window_params = [{transform_indices = @transform_0, window_bounds = array<i64: 8, 4>}, {pipeline_mode = #tpu.pipeline_mode<synchronous>, transform_indices = @transform_1, window_bounds = array<i64: 4, 128>}, {pipeline_mode = #tpu.pipeline_mode<synchronous>, transform_indices = @transform_2, window_bounds = array<i64: 1, 128>}, {pipeline_mode = #tpu.pipeline_mode<synchronous>, transform_indices = @transform_3, window_bounds = array<i64: 128, 128>}, {pipeline_mode = #tpu.pipeline_mode<synchronous>, transform_indices = @transform_4, window_bounds = array<i64: 1, 128>}, {pipeline_mode = #tpu.pipeline_mode<synchronous>, transform_indices = @transform_5, window_bounds = array<i64: 128, 128>}, {pipeline_mode = #tpu.pipeline_mode<synchronous>, transform_indices = @transform_6, window_bounds = array<i64: 1, 128>}, {transform_indices = @transform_7, window_bounds = array<i64: 8, 128>}]} {
    %c0 = arith.constant 0 : index
    %c0_0 = arith.constant 0 : index
    %0 = vector.load %arg1[%c0, %c0_0] : memref<8x4xf32, #tpu.memory_space<vmem>>, vector<8x4xf32>
    %1 = arith.truncf %0 : vector<8x4xf32> to vector<8x4xbf16>
    %c0_1 = arith.constant 0 : index
    %c0_2 = arith.constant 0 : index
    %2 = vector.load %arg2[%c0_1, %c0_2] : memref<4x128xbf16, #tpu.memory_space<vmem>>, vector<4x128xbf16>
    %cst = arith.constant dense<0.000000e+00> : vector<8x128xf32>
    %3 = tpu.matmul %1, %2, %cst {dimension_numbers = #tpu.dot_dimension_numbers<[1], [0], [0], [1], [0, 0, 1, 1], [], []>} : vector<8x4xbf16>, vector<4x128xbf16>, vector<8x128xf32> -> vector<8x128xf32>
    %c0_3 = arith.constant 0 : index
    %c0_4 = arith.constant 0 : index
    %4 = vector.load %arg3[%c0_3, %c0_4] : memref<1x128xf32, #tpu.memory_space<vmem>>, vector<1x128xf32>
    %5 = vector.broadcast %4 : vector<1x128xf32> to vector<8x128xf32>
    %6 = arith.addf %3, %5 : vector<8x128xf32>
    %cst_5 = arith.constant 0.000000e+00 : f32
    %7 = vector.broadcast %cst_5 : f32 to vector<8x128xf32>
    %8 = arith.maximumf %6, %7 : vector<8x128xf32>
    %9 = arith.truncf %8 : vector<8x128xf32> to vector<8x128xbf16>
    %c0_6 = arith.constant 0 : index
    %c0_7 = arith.constant 0 : index
    %10 = vector.load %arg4[%c0_6, %c0_7] : memref<128x128xbf16, #tpu.memory_space<vmem>>, vector<128x128xbf16>
    %cst_8 = arith.constant dense<0.000000e+00> : vector<8x128xf32>
    %11 = tpu.matmul %9, %10, %cst_8 {dimension_numbers = #tpu.dot_dimension_numbers<[1], [0], [0], [1], [0, 0, 1, 1], [], []>} : vector<8x128xbf16>, vector<128x128xbf16>, vector<8x128xf32> -> vector<8x128xf32>
    %c0_9 = arith.constant 0 : index
    %c0_10 = arith.constant 0 : index
    %12 = vector.load %arg5[%c0_9, %c0_10] : memref<1x128xf32, #tpu.memory_space<vmem>>, vector<1x128xf32>
    %13 = vector.broadcast %12 : vector<1x128xf32> to vector<8x128xf32>
    %14 = arith.addf %11, %13 : vector<8x128xf32>
    %cst_11 = arith.constant 0.000000e+00 : f32
    %15 = vector.broadcast %cst_11 : f32 to vector<8x128xf32>
    %16 = arith.maximumf %14, %15 : vector<8x128xf32>
    %17 = arith.truncf %16 : vector<8x128xf32> to vector<8x128xbf16>
    %c0_12 = arith.constant 0 : index
    %c0_13 = arith.constant 0 : index
    %18 = vector.load %arg6[%c0_12, %c0_13] : memref<128x128xbf16, #tpu.memory_space<vmem>>, vector<128x128xbf16>
    %cst_14 = arith.constant dense<0.000000e+00> : vector<8x128xf32>
    %19 = tpu.matmul %17, %18, %cst_14 {dimension_numbers = #tpu.dot_dimension_numbers<[1], [0], [0], [1], [0, 0, 1, 1], [], []>} : vector<8x128xbf16>, vector<128x128xbf16>, vector<8x128xf32> -> vector<8x128xf32>
    %c0_15 = arith.constant 0 : index
    %c0_16 = arith.constant 0 : index
    %20 = vector.load %arg7[%c0_15, %c0_16] : memref<1x128xf32, #tpu.memory_space<vmem>>, vector<1x128xf32>
    %21 = vector.broadcast %20 : vector<1x128xf32> to vector<8x128xf32>
    %22 = arith.addf %19, %21 : vector<8x128xf32>
    %c0_17 = arith.constant 0 : index
    %c0_18 = arith.constant 0 : index
    %23 = vector.load %arg8[%c0_17, %c0_18] : memref<8x128xf32, #tpu.memory_space<vmem>>, vector<8x128xf32>
    tpu.vector_store %arg8[%c0_17, %c0_18], %22 {strides = array<i32>} : memref<8x128xf32, #tpu.memory_space<vmem>>, vector<8x128xf32>,
    return
  }
  func.func @transform_0(%arg0: i32) -> (i32, i32) {
    %c0_i32 = arith.constant 0 : i32
    %c0_i32_0 = arith.constant 0 : i32
    return %arg0, %c0_i32 : i32, i32
  }
  func.func @transform_1(%arg0: i32) -> (i32, i32) {
    %c0_i32 = arith.constant 0 : i32
    %c0_i32_0 = arith.constant 0 : i32
    %c0_i32_1 = arith.constant 0 : i32
    return %c0_i32, %c0_i32_0 : i32, i32
  }
  func.func @transform_2(%arg0: i32) -> (i32, i32) {
    %c0_i32 = arith.constant 0 : i32
    %c0_i32_0 = arith.constant 0 : i32
    %c0_i32_1 = arith.constant 0 : i32
    return %c0_i32, %c0_i32_0 : i32, i32
  }
  func.func @transform_3(%arg0: i32) -> (i32, i32) {
    %c0_i32 = arith.constant 0 : i32
    %c0_i32_0 = arith.constant 0 : i32
    %c0_i32_1 = arith.constant 0 : i32
    return %c0_i32, %c0_i32_0 : i32, i32
  }
  func.func @transform_4(%arg0: i32) -> (i32, i32) {
    %c0_i32 = arith.constant 0 : i32
    %c0_i32_0 = arith.constant 0 : i32
    %c0_i32_1 = arith.constant 0 : i32
    return %c0_i32, %c0_i32_0 : i32, i32
  }
  func.func @transform_5(%arg0: i32) -> (i32, i32) {
    %c0_i32 = arith.constant 0 : i32
    %c0_i32_0 = arith.constant 0 : i32
    %c0_i32_1 = arith.constant 0 : i32
    return %c0_i32, %c0_i32_0 : i32, i32
  }
  func.func @transform_6(%arg0: i32) -> (i32, i32) {
    %c0_i32 = arith.constant 0 : i32
    %c0_i32_0 = arith.constant 0 : i32
    %c0_i32_1 = arith.constant 0 : i32
    return %c0_i32, %c0_i32_0 : i32, i32
  }
  func.func @transform_7(%arg0: i32) -> (i32, i32) {
    %c0_i32 = arith.constant 0 : i32
    %c0_i32_0 = arith.constant 0 : i32
    return %arg0, %c0_i32 : i32, i32
  }
}

</mosaic_0001>

<bundles_post_ra>
// kernel: tpu_custom_call.1
= control target key start
LH: loop header
LB: loop body
LE: loop exit
PB: predicated region body
PF: predicated region fallthrough
CT: control target
= control target key end

     0   :  { %12 = vsyncpa [#allocation3], 0  ;;  %s626_s0 = inlined_call_operand.vmem [shape: f32[8,4], index: 0, kind: input, shape index: {}]   ;;  %s627_s1 = inlined_call_operand.vmem [shape: bf16[4,128], index: 1, kind: input, shape index: {}]   ;;  %s628_s2 = inlined_call_operand.vmem [shape: f32[1,128], index: 2, kind: input, shape index: {}]   ;;  %s629_s3 = inlined_call_operand.hbm [shape: bf16[128,128], index: 3, kind: input, shape index: {}]   ;;  %s630_s4 = inlined_call_operand.vmem [shape: f32[1,128], index: 4, kind: input, shape index: {}]   ;;  %s631_s5 = inlined_call_operand.hbm [shape: bf16[128,128], index: 5, kind: input, shape index: {}]   ;;  %s632_s6 = inlined_call_operand.vmem [shape: f32[1,128], index: 6, kind: input, shape index: {}]   ;;  %s633_s7 = inlined_call_operand.hbm [shape: f32[8,128], index: 7, kind: output, shape index: {}]  }
   0x1   :  { %13 = vsyncpa [#allocation6], 0 }
   0x2   :  { %14 = vsyncpa [#allocation4], 0  ;;  %s532_s24 = smov [#allocation2]  }
   0x3   :  { %s26_s25 = sshll.u32 %s532_s24, 4  ;;  %s27_s25 = int_to_ptr.vmem [resolvable:$true] %s26_s25 }
   0x4   :  { %s474_s26 = scalar_lea.vmem %s27_s25, 1024  ;;  %p479_p1 = scmp.lt.s32.totalorder %s27_s25, %s27_s25 }
   0x5   :  { %p475_p0 = scmp.ne.s32.totalorder %s27_s25, %s474_s26  ;;  %p480_p2 = scmp.lt.s32.totalorder %s474_s26, %s474_s26 }
   0x7   :  { %p481_p3 = por %p480_p2, %p479_p1 }
   0x9   :  { %p482_p4 = pnand %p481_p3, %p475_p0 }
   0xb   :  { %485 = shalt.err (!%p482_p4)
}
   0xc   :  { %s533_s27 = smov 64   ;;  %s534_s28 = smov 4  }
   0xd   :  { %32 = dma.hbm_to_vmem [thread:$0]  %s629_s3, 1024, %s27_s25, [#allocation3], %s533_s27, %s533_s27, %s534_s28  }
   0xe   :  { %s535_s8 = smov [#allocation5]  }
   0xf   :  { %s40_s9 = sshll.u32 %s535_s8, 4  ;;  %s41_s9 = int_to_ptr.vmem [resolvable:$true] %s40_s9 }
  0x10   :  { %s494_s10 = scalar_lea.vmem %s41_s9, 1024  ;;  %p499_p6 = scmp.lt.s32.totalorder %s41_s9, %s41_s9 }
  0x11   :  { %p495_p5 = scmp.ne.s32.totalorder %s41_s9, %s494_s10  ;;  %p500_p7 = scmp.lt.s32.totalorder %s494_s10, %s494_s10 }
  0x13   :  { %p501_p8 = por %p500_p7, %p499_p6 }
  0x15   :  { %p502_p9 = pnand %p501_p8, %p495_p5 }
  0x17   :  { %505 = shalt.err (!%p502_p9)
}
  0x18   :  { %46 = dma.hbm_to_vmem [thread:$0]  %s631_s5, 1024, %s41_s9, [#allocation6], %s533_s27, %s533_s27, %s534_s28  }
  0x19   :  { %526 = dma.done.wait [#allocation3], 1024  }
  0x1a   :  { %527 = vsyncadd [#allocation3], 4294966272 }
  0x1b   :  { %528 = dma.done.wait [#allocation6], 1024  }
  0x1c   :  { %529 = vsyncadd [#allocation6], 4294966272  ;;  %v536_v0 = vmov 0.0   ;;  %vm537_vm0 = vmmov 0   ;;  %vm70_vm1 = vcmask 1041408   ;;  %v56_v2 = vld [vmem:[%s626_s0] sm:$0xff] }
  0x1d   :  { %397 = vmatprep.subr.bf16.mxu0 %v536_v0  ;;  %399 = vmatprep.mubr.msk.bf16.mxu0 %vm537_vm0, %v536_v0  ;;  %v58_v1 = vld [vmem:[%s627_s1] sm:$0x3]  ;;  %v57_v4 = vpack.c.bf16 %v56_v2, %v56_v2  ;;  %v450_v5 = vld [vmem:[#allocation2 + $0x38] sm:$0xff]   ;;  %vm66_vm2 = vcmask 31744   ;;  %v451_v6 = vld [vmem:[#allocation2 + $0x30] sm:$0xff]   ;;  %s538_s18 = smov [#allocation7]  }
  0x1e   :  { %403 = vmatprep.subr.bf16.mxu1 %v536_v0  ;;  %419 = vmatprep.mubr.msk.bf16.mxu1 %vm537_vm0, %v536_v0  ;;  %v72_v3 = vsel %vm70_vm1, %v58_v1, 0  ;;  %v452_v7 = vld [vmem:[#allocation2 + $0x28] sm:$0xff]   ;;  %v453_v8 = vld [vmem:[#allocation2 + $0x20] sm:$0xff]   ;;  %v454_v9 = vld [vmem:[#allocation2 + $0x18] sm:$0xff]   ;;  %s347_s19 = sshll.u32 %s538_s18, 4  ;;  %s348_s19 = int_to_ptr.vmem [resolvable:$true] %s347_s19 }
  0x1f   :  { %398 = vmatpush3.bf16.msra.mxu0 %v72_v3  ;;  %404 = vmatpush3.bf16.msra.mxu1 %v450_v5  ;;  %v455_v10 = vld [vmem:[#allocation2 + $0x10] sm:$0xff]   ;;  %v456_v11 = vld [vmem:[#allocation2 + $0x8] sm:$0xff]   ;;  %v457_v12 = vld [vmem:[#allocation2] sm:$0xff]   ;;  %p511_p11 = scmp.lt.s32.totalorder %s348_s19, %s348_s19 }
  0x20   :  { %423 = vmatprep.subr.bf16.mxu0 %v536_v0  ;;  %405 = vmatprep.subr.bf16.mxu1 %v536_v0  ;;  %v458_v13 = vld [vmem:[#allocation5 + $0x38] sm:$0xff]   ;;  %v459_v14 = vld [vmem:[#allocation5 + $0x30] sm:$0xff]   ;;  %v460_v15 = vld [vmem:[#allocation5 + $0x28] sm:$0xff]  }
  0x21   :  { %v461_v16 = vld [vmem:[#allocation5 + $0x20] sm:$0xff]   ;;  %v462_v17 = vld [vmem:[#allocation5 + $0x18] sm:$0xff]   ;;  %v463_v18 = vld [vmem:[#allocation5 + $0x10] sm:$0xff]  }
  0x22   :  { %400 = vmatmul.mubr.msk.bf16.vlgmr.msra.gmra.mxu0 %vm66_vm2, %v57_v4  ;;  %v357_v19 = vld [vmem:[%s628_s2] ss:$0 sm:$0xff]  ;;  %v464_v27 = vld [vmem:[#allocation5 + $0x8] sm:$0xff]  }
  0x23   :  { %439 = vmatprep.mubr.msk.bf16.mxu0 %vm537_vm0, %v536_v0  ;;  %406 = vmatpush3.bf16.msra.mxu1 %v451_v6  ;;  %v465_v28 = vld [vmem:[#allocation5] sm:$0xff]  }
  0x24   :  { %407 = vmatprep.subr.bf16.mxu1 %v536_v0  ;;  %424 = vmatpush3.bf16.msra.mxu0 %v458_v13  ;;  %v359_v29 = vld [vmem:[%s630_s4] ss:$0 sm:$0xff]  ;;  %s506_s4 = scalar_lea.vmem %s348_s19, 128 }
  0x25   :  { %425 = vmatprep.subr.bf16.mxu0 %v536_v0  ;;  %v368_v37 = vld [vmem:[%s632_s6] ss:$0 sm:$0xff]  ;;  %p507_p10 = scmp.ne.s32.totalorder %s348_s19, %s506_s4  ;;  %p512_p12 = scmp.lt.s32.totalorder %s506_s4, %s506_s4 }
  0x27   :  { %408 = vmatpush3.bf16.msra.mxu1 %v452_v7  ;;  %p513_p13 = por %p512_p12, %p511_p11 }
  0x28   :  { %409 = vmatprep.subr.bf16.mxu1 %v536_v0  ;;  %426 = vmatpush3.bf16.msra.mxu0 %v459_v14 }
  0x29   :  { %427 = vmatprep.subr.bf16.mxu0 %v536_v0  ;;  %p514_p0 = pnand %p513_p13, %p507_p10 }
  0x2b   :  { %410 = vmatpush3.bf16.msra.mxu1 %v453_v8 }
  0x2c   :  { %411 = vmatprep.subr.bf16.mxu1 %v536_v0  ;;  %428 = vmatpush3.bf16.msra.mxu0 %v460_v15 }
  0x2d   :  { %429 = vmatprep.subr.bf16.mxu0 %v536_v0 }
  0x2f   :  { %412 = vmatpush3.bf16.msra.mxu1 %v454_v9 }
  0x30   :  { %413 = vmatprep.subr.bf16.mxu1 %v536_v0  ;;  %430 = vmatpush3.bf16.msra.mxu0 %v461_v16 }
  0x31   :  { %431 = vmatprep.subr.bf16.mxu0 %v536_v0 }
  0x33   :  { %414 = vmatpush3.bf16.msra.mxu1 %v455_v10 }
  0x34   :  { %415 = vmatprep.subr.bf16.mxu1 %v536_v0  ;;  %432 = vmatpush3.bf16.msra.mxu0 %v462_v17 }
  0x35   :  { %433 = vmatprep.subr.bf16.mxu0 %v536_v0 }
  0x37   :  { %416 = vmatpush3.bf16.msra.mxu1 %v456_v11 }
  0x38   :  { %417 = vmatprep.subr.bf16.mxu1 %v536_v0  ;;  %434 = vmatpush3.bf16.msra.mxu0 %v463_v18 }
  0x39   :  { %435 = vmatprep.subr.bf16.mxu0 %v536_v0 }
  0x3b   :  { %418 = vmatpush3.bf16.msra.mxu1 %v457_v12 }
  0x3c   :  { %436 = vmatpush3.bf16.msra.mxu0 %v464_v27 }
  0x3d   :  { %437 = vmatprep.subr.bf16.mxu0 %v536_v0 }
  0x40   :  { %438 = vmatpush3.bf16.msra.mxu0 %v465_v28 }
  0xe2   :  { %v108_v20 = vpop.f32.mrf.mxu0 }
  0xe3   :  { %v109_v21 = vadd.f32 %v357_v19, %v108_v20 }
  0xe4   :  { %v401_v22 = vpop.f32.mrf.mxu0 }
  0xe5   :  { %v114_v23 = vmax.f32 %v109_v21, 0.0 }
  0xe6   :  { %v111_v24 = vpop.f32.mrf.mxu0 }
  0xe7   :  { %v115_v25 = vpack.c.bf16 %v114_v23, %v114_v23 }
  0xe8   :  { %v402_v26 = vpop.f32.mrf.mxu0 }
  0xe9   :  { %420 = vmatmul.mubr.bf16.vlgmr.msra.gmra.mxu1 %v115_v25 }
 0x1a9   :  { %v221_v30 = vpop.f32.mrf.mxu1 }
 0x1aa   :  { %v222_v31 = vadd.f32 %v359_v29, %v221_v30 }
 0x1ab   :  { %v421_v32 = vpop.f32.mrf.mxu1 }
 0x1ac   :  { %v227_v33 = vmax.f32 %v222_v31, 0.0 }
 0x1ad   :  { %v224_v34 = vpop.f32.mrf.mxu1 }
 0x1ae   :  { %v228_v35 = vpack.c.bf16 %v227_v33, %v227_v33 }
 0x1af   :  { %v422_v36 = vpop.f32.mrf.mxu1 }
 0x1b0   :  { %440 = vmatmul.mubr.bf16.vlgmr.msra.gmra.mxu0 %v228_v35 }
 0x270   :  { %v334_v38 = vpop.f32.mrf.mxu0 }
 0x271   :  { %v335_v39 = vadd.f32 %v368_v37, %v334_v38 }
 0x272   :  { %v441_v40 = vpop.f32.mrf.mxu0 }
 0x273   :  { %340 = vst [vmem:[#allocation7] sm:$0xff] %v335_v39 }
 0x274   :  { %v337_v41 = vpop.f32.mrf.mxu0 }
 0x275   :  { %517 = shalt.err (!%p514_p0)
}
 0x276   :  { %350 = dma.vmem_to_hbm [thread:$0]  %s348_s19, 128, %s633_s7, [#allocation4]   ;;  %v442_v42 = vpop.f32.mrf.mxu0 }
 0x277   :  { %530 = dma.done.wait [#allocation4], 128  }
 0x278   :  { %531 = vsyncadd [#allocation4], 4294967168 }
 0x279   :  { %354 = vsyncpa [#allocation3], 1 }
 0x27a   :  { %355 = vsyncpa [#allocation6], 1 }
 0x27b   :  { %356 = vsyncpa [#allocation4], 1 }

</bundles_post_ra>
